<compile_context>
chip_gen: v6e
topology: v6e:2x2x1
jax: 0.10.0
libtpu: 0.0.40
codegen_flags: <defaults>
</compile_context>

<pallas_src>
import jax
import jax.numpy as jnp
from jax.experimental import pallas as pl


# ---------------------------------------------------------------- kernel helpers

def _softmax_write(score, o_ref):
    # score: (B, S); softmax over S, single lane-dense store to o_ref (B, S).
    m = jnp.max(score, axis=-1, keepdims=True)
    p = jnp.exp(score - m)
    denom = jnp.sum(p, axis=-1, keepdims=True)
    o_ref[...] = p * pl.reciprocal(denom, approx=True)   # EUP reciprocal, no VPU divide


# ---------------------------------------------------------------- kernels (one per method)

def _dot_kernel(h_ref, e_ref, o_ref):
    h = h_ref[...]                                   # (B, H)
    enc = e_ref[...]                                 # (B, S, H)
    # sum(hidden * enc, dim=2): VPU mul + XLU lane reduce (no MXU).
    score = jnp.sum(h[:, None, :] * enc, axis=-1)    # (B, S)
    _softmax_write(score, o_ref)


def _general_kernel(h_ref, e_ref, w_ref, b_ref, o_ref):
    h = h_ref[...]                                   # (B, H)
    enc = e_ref[...]                                 # (B, S, H)
    B, S, H = enc.shape
    A = w_ref.shape[1]
    # Single (B*S, H) @ (H, A) matmul: batch folded into the MXU M dimension.
    energy = (jnp.dot(enc.reshape(B * S, H), w_ref[...],
                      preferred_element_type=jnp.float32)
              + b_ref[...]).reshape(B, S, A)
    # sum(hidden * energy, dim=2) -- requires A == H (checked in the wrapper).
    score = jnp.sum(h[:, None, :] * energy, axis=-1)   # (B, S)
    _softmax_write(score, o_ref)


def _concat_kernel(h_ref, e_ref, w1_ref, w2_ref, b_ref, v_ref, o_ref):
    h = h_ref[...]                                   # (B, H)
    enc = e_ref[...]                                 # (B, S, H)
    B, S, H = enc.shape
    A = w1_ref.shape[1]
    # Linear on cat([hidden_expanded, enc], -1) == h @ W[:H] + enc @ W[H:] + b
    eh = jnp.dot(h, w1_ref[...], preferred_element_type=jnp.float32)            # (B, A)
    ee = (jnp.dot(enc.reshape(B * S, H), w2_ref[...],
                  preferred_element_type=jnp.float32)
          + b_ref[...]).reshape(B, S, A)                                          # (B, S, A)
    energy = eh[:, None, :] + ee
    score = jnp.sum(v_ref[...][None] * energy, axis=-1)                           # (B, S)
    _softmax_write(score, o_ref)


def _perceptron_kernel(h_ref, e_ref, wq_ref, bq_ref, wk_ref, bk_ref, v_ref, o_ref):
    h = h_ref[...]                                   # (B, H)
    enc = e_ref[...]                                 # (B, S, H)
    B, S, H = enc.shape
    A = wq_ref.shape[1]
    eq = jnp.dot(h, wq_ref[...], preferred_element_type=jnp.float32) + bq_ref[...]   # (B, A)
    ek = (jnp.dot(enc.reshape(B * S, H), wk_ref[...],
                  preferred_element_type=jnp.float32)
          + bk_ref[...]).reshape(B, S, A)                                             # (B, S, A)
    energy = jnp.tanh(eq[:, None, :] + ek)                                            # EUP
    score = jnp.sum(v_ref[...][None] * energy, axis=-1)                               # (B, S)
    _softmax_write(score, o_ref)


# ---------------------------------------------------------------- wrapper

def atten_forward(method, hidden, encoder_outputs, params):
    B, _, H = hidden.shape
    _, S, _ = encoder_outputs.shape

    if method == 'dot':
        kernel, extra = _dot_kernel, []
    elif method == 'general':
        # PyTorch's broadcasting in general_score only works when atten_size == hidden_size.
        assert params['w_g'].shape[1] == H, "'general' requires atten_size == hidden_size"
        kernel, extra = _general_kernel, [params['w_g'], params['b_g']]
    elif method == 'concat':
        kernel, extra = _concat_kernel, [params['w_c1'], params['w_c2'],
                                         params['b_c'], params['v_c']]
    elif method == 'perceptron':
        kernel, extra = _perceptron_kernel, [params['w_q'], params['b_q'],
                                             params['w_k'], params['b_k'], params['v_p']]
    else:
        # TODO(synk): 'cosine' is not handled by the PyTorch forward (attn_energies undefined);
        # not implemented here either.
        raise ValueError(method, 'is not an appropriate attention method.')

    # Whole-batch, single-invocation call: no grid, all operands are full-array VMEM blocks.
    out2d = pl.pallas_call(
        kernel,
        out_shape=jax.ShapeDtypeStruct((B, S), jnp.float32),
    )(hidden.reshape(B, H), encoder_outputs, *extra)

    # Match PyTorch: softmax(..., dim=1).unsqueeze(1) -> (B, 1, S)
    return out2d.reshape(B, 1, S)


# ---------------------------------------------------------------- pure-JAX reference

def atten_ref(method, hidden, enc, params):
    B, _, H = hidden.shape
    S = enc.shape[1]
    if method == 'dot':
        score = jnp.sum(hidden * enc, axis=2)
    elif method == 'general':
        energy = enc @ params['w_g'] + params['b_g']
        score = jnp.sum(hidden * energy, axis=2)
    elif method == 'concat':
        h_exp = jnp.broadcast_to(hidden, (B, S, H))
        cat = jnp.concatenate([h_exp, enc], axis=2)
        w = jnp.concatenate([params['w_c1'], params['w_c2']], axis=0)
        energy = cat @ w + params['b_c']
        score = jnp.sum(params['v_c'] * energy, axis=2)
    elif method == 'perceptron':
        h_exp = jnp.broadcast_to(hidden, (B, S, H))
        eq = h_exp @ params['w_q'] + params['b_q']
        ek = enc @ params['w_k'] + params['b_k']
        energy = jnp.tanh(eq + ek)
        score = jnp.sum(params['v_p'] * energy, axis=2)
    return jax.nn.softmax(score, axis=1)[:, None, :]


# ---------------------------------------------------------------- main

if __name__ == "__main__":
    B, S, H, A = 2, 8, 32, 32  # atten_size == hidden_size so 'general' matches PyTorch broadcasting

    key = jax.random.PRNGKey(0)
    ks = jax.random.split(key, 13)
    hidden = jax.random.normal(ks[0], (B, 1, H), jnp.float32)
    enc = jax.random.normal(ks[1], (B, S, H), jnp.float32)

    # Deterministic synthetic parameters. Linear weights stored pre-transposed as (in, out).
    params = {
        'w_g':  0.1 * jax.random.normal(ks[2],  (H, A), jnp.float32),
        'b_g':  0.1 * jax.random.normal(ks[3],  (1, A), jnp.float32),
        'w_c1': 0.1 * jax.random.normal(ks[4],  (H, A), jnp.float32),
        'w_c2': 0.1 * jax.random.normal(ks[5],  (H, A), jnp.float32),
        'b_c':  0.1 * jax.random.normal(ks[6],  (1, A), jnp.float32),
        'v_c':  0.1 * jax.random.normal(ks[7],  (1, A), jnp.float32),
        'w_q':  0.1 * jax.random.normal(ks[8],  (H, A), jnp.float32),
        'b_q':  0.1 * jax.random.normal(ks[9],  (1, A), jnp.float32),
        'w_k':  0.1 * jax.random.normal(ks[10], (H, A), jnp.float32),
        'b_k':  0.1 * jax.random.normal(ks[11], (1, A), jnp.float32),
        'v_p':  0.1 * jax.random.normal(ks[12], (1, A), jnp.float32),
    }

    for method in ['dot', 'general', 'concat', 'perceptron']:
        out = jax.block_until_ready(atten_forward(method, hidden, enc, params))
        ref = atten_ref(method, hidden, enc, params)
        assert out.shape == (B, 1, S), (method, out.shape)
        # tolerance relaxed vs f32 exact because of the EUP approximate reciprocal
        assert jnp.allclose(out, ref, atol=2e-3, rtol=2e-3), method
        # rows of the softmax sum to ~1
        assert jnp.allclose(jnp.sum(out, axis=-1), 1.0, atol=2e-3), method

    print("KERNEL_OK")
</pallas_src>

<mosaic_0001>
module attributes {stable_mosaic.version = 11 : i64} {
  func.func @_dot_kernel(%arg0: memref<2x32xf32, #tpu.memory_space<vmem>>, %arg1: memref<2x8x32xf32, #tpu.memory_space<vmem>>, %arg2: memref<2x8xf32, #tpu.memory_space<vmem>>) attributes {dimension_semantics = [], scalar_prefetch = 0 : i64, scratch_operands = 0 : i64, tpu.core_type = #tpu.core_type<tc>} {
    %c0 = arith.constant 0 : index
    %c0_0 = arith.constant 0 : index
    %0 = vector.load %arg0[%c0, %c0_0] : memref<2x32xf32, #tpu.memory_space<vmem>>, vector<2x32xf32>
    %c0_1 = arith.constant 0 : index
    %c0_2 = arith.constant 0 : index
    %c0_3 = arith.constant 0 : index
    %1 = vector.load %arg1[%c0_1, %c0_2, %c0_3] : memref<2x8x32xf32, #tpu.memory_space<vmem>>, vector<2x8x32xf32>
    %2 = vector.shape_cast %0 : vector<2x32xf32> to vector<2x1x32xf32>
    %3 = vector.broadcast %2 : vector<2x1x32xf32> to vector<2x8x32xf32>
    %4 = arith.mulf %3, %1 : vector<2x8x32xf32>
    %cst = arith.constant dense<0.000000e+00> : vector<2x8xf32>
    %5 = vector.multi_reduction <add>, %4, %cst [2] : vector<2x8x32xf32> to vector<2x8xf32>
    %cst_4 = arith.constant dense<0xFF800000> : vector<2xf32>
    %6 = vector.multi_reduction <maximumf>, %5, %cst_4 [1] : vector<2x8xf32> to vector<2xf32>
    %7 = vector.shape_cast %6 : vector<2xf32> to vector<2x1xf32>
    %8 = vector.broadcast %7 : vector<2x1xf32> to vector<2x8xf32>
    %9 = arith.subf %5, %8 : vector<2x8xf32>
    %10 = math.exp %9 : vector<2x8xf32>
    %cst_5 = arith.constant dense<0.000000e+00> : vector<2xf32>
    %11 = vector.multi_reduction <add>, %10, %cst_5 [1] : vector<2x8xf32> to vector<2xf32>
    %12 = vector.shape_cast %11 : vector<2xf32> to vector<2x1xf32>
    %13 = tpu.reciprocal %12 {approx = true} : vector<2x1xf32> -> vector<2x1xf32>
    %14 = vector.broadcast %13 : vector<2x1xf32> to vector<2x8xf32>
    %15 = arith.mulf %10, %14 : vector<2x8xf32>
    %c0_6 = arith.constant 0 : index
    %c0_7 = arith.constant 0 : index
    %16 = vector.load %arg2[%c0_6, %c0_7] : memref<2x8xf32, #tpu.memory_space<vmem>>, vector<2x8xf32>
    tpu.vector_store %arg2[%c0_6, %c0_7], %15 {strides = array<i32>} : memref<2x8xf32, #tpu.memory_space<vmem>>, vector<2x8xf32>,
    return
  }
}

</mosaic_0001>

<bundles_post_ra>
// kernel: tpu_custom_call.1
= control target key start
LH: loop header
LB: loop body
LE: loop exit
PB: predicated region body
PF: predicated region fallthrough
CT: control target
= control target key end

     0   :  { %7 = vsyncpa [#allocation3], 0  ;;  %s316_s0 = inlined_call_operand.hbm [shape: f32[2,32], index: 0, kind: input, shape index: {}]   ;;  %s317_s1 = inlined_call_operand.hbm [shape: f32[2,8,32], index: 1, kind: input, shape index: {}]   ;;  %s318_s2 = inlined_call_operand.hbm [shape: f32[2,8], index: 2, kind: output, shape index: {}]  }
   0x1   :  { %8 = vsyncpa [#allocation6], 0 }
   0x2   :  { %9 = vsyncpa [#allocation4], 0  ;;  %s271_s9 = smov [#allocation2]   ;;  %s272_s11 = smov [#allocation5]  }
   0x3   :  { %s16_s10 = sshll.u32 %s271_s9, 4  ;;  %s25_s12 = sshll.u32 %s272_s11, 4  ;;  %s17_s10 = int_to_ptr.vmem [resolvable:$true] %s16_s10  ;;  %s26_s12 = int_to_ptr.vmem [resolvable:$true] %s25_s12 }
   0x4   :  { %s213_s13 = scalar_lea.vmem %s17_s10, 32  ;;  %p218_p1 = scmp.lt.s32.totalorder %s17_s10, %s17_s10 }
   0x5   :  { %p214_p0 = scmp.ne.s32.totalorder %s17_s10, %s213_s13  ;;  %p219_p2 = scmp.lt.s32.totalorder %s213_s13, %s213_s13 }
   0x7   :  { %p220_p3 = por %p219_p2, %p218_p1 }
   0x9   :  { %p221_p4 = pnand %p220_p3, %p214_p0 }
   0xb   :  { %224 = shalt.err (!%p221_p4)
}
   0xc   :  { %19 = dma.hbm_to_vmem [thread:$0]  %s316_s0, 32, %s17_s10, [#allocation3]  }
   0xd   :  { %s233_s16 = scalar_lea.vmem %s26_s12, 256  ;;  %p238_p6 = scmp.lt.s32.totalorder %s26_s12, %s26_s12 }
   0xe   :  { %p234_p5 = scmp.ne.s32.totalorder %s26_s12, %s233_s16  ;;  %p239_p7 = scmp.lt.s32.totalorder %s233_s16, %s233_s16 }
  0x10   :  { %p240_p8 = por %p239_p7, %p238_p6 }
  0x12   :  { %p241_p9 = pnand %p240_p8, %p234_p5 }
  0x14   :  { %244 = shalt.err (!%p241_p9)
}
  0x15   :  { %s273_s17 = smov 128   ;;  %s274_s18 = smov 8  }
  0x16   :  { %31 = dma.hbm_to_vmem [thread:$0]  %s317_s1, 256, %s26_s12, [#allocation6], %s273_s17, %s273_s17, %s274_s18  }
  0x17   :  { %265 = dma.done.wait [#allocation3], 32  }
  0x18   :  { %266 = vsyncadd [#allocation3], 4294967264 }
  0x19   :  { %267 = dma.done.wait [#allocation6], 256  }
  0x1a   :  { %268 = vsyncadd [#allocation6], 4294967040  ;;  %v53_v0 = vlaneseq  ;;  %v275_v1 = vmov 1966171168   ;;  %v39_v12 = vld [vmem:[#allocation5] sm:$0xff]  ;;  %vm76_vm0 = vcmask 261120  }
  0x1b   :  { %v51_v2 = vunpack.c.l.s4 %v275_v1  ;;  %v189_v9 = vld.sshfl [vmem:[#allocation2] sm:$0x11 pattern:$0x75316420]  ;;  %v40_v15 = vld [vmem:[#allocation5 + $0x8] sm:$0xff]  ;;  %vm95_vm1 = vcmask 1041409  }
  0x1c   :  { %v54_v3 = vshrl.u32 %v53_v0, 7  ;;  %v86_v4 = vand.u32 127, %v53_v0  ;;  %v49_v11 = vcombine.high %v189_v9, %v189_v9  ;;  %vm98_vm2 = vcmask 58368   ;;  %s277_s0 = smov [#allocation7]  }
  0x1d   :  { %v52_v5 = vunpack.c.0.s8 %v51_v2  ;;  %v276_v27 = vmov 0   ;;  %s179_s1 = sshll.u32 %s277_s0, 4  ;;  %s180_s1 = int_to_ptr.vmem [resolvable:$true] %s179_s1 }
  0x1e   :  { %v299_v6 = vsub.s32 %v86_v4, %v54_v3  ;;  %v66_v8 = vsub.s32 0, %v54_v3  ;;  %198 = vset.pattern.permute.xlu0 %v276_v27  ;;  %197 = vset.pattern.permute.xlu1 %v276_v27  ;;  %v109_v28 = vsub.s32 1, %v54_v3  ;;  %s245_s21 = scalar_lea.vmem %s180_s1, 32  ;;  %p250_p11 = scmp.lt.s32.totalorder %s180_s1, %s180_s1 }
  0x1f   :  { %v55_v7 = vsub.s32 %v52_v5, %v54_v3  ;;  %p246_p10 = scmp.ne.s32.totalorder %s180_s1, %s245_s21  ;;  %p251_p12 = scmp.lt.s32.totalorder %s245_s21, %s245_s21 }
  0x21   :  { %v56_v10 = vrot.slane %v189_v9, %v55_v7  ;;  %v63_v14 = vrot.slane %v49_v11, %v55_v7  ;;  %p252_p13 = por %p251_p12, %p250_p11 }
  0x23   :  { %v67_v13 = vrot.slane %v56_v10, %v66_v8  ;;  %v71_v17 = vrot.slane %v63_v14, %v66_v8  ;;  %p253_p0 = pnand %p252_p13, %p246_p10 }
  0x25   :  { %v74_v16 = vmul.f32 %v67_v13, %v39_v12  ;;  %v75_v19 = vmul.f32 %v71_v17, %v40_v15 }
  0x27   :  { %v77_v18 = vsel %vm76_vm0, %v74_v16, 0.0  ;;  %v80_v20 = vsel %vm76_vm0, %v75_v19, 0.0 }
  0x28   :  { %78 = vadd.xlane.f32.xlu0 %v77_v18 }
  0x2c   :  { %81 = vadd.xlane.f32.xlu0 %v80_v20 }
  0xb1   :  { %v79_v21 = vpop.xlane.xlu0 %78 }
  0xb2   :  { %v90_v23 = vrot.slane %v79_v21, %v299_v6 }
  0xb5   :  { %v82_v22 = vpop.xlane.xlu0 %81 }
  0xb6   :  { %v94_v24 = vrot.slane %v82_v22, %v299_v6 }
  0xb8   :  { %v96_v25 = vsel %vm95_vm1, %v94_v24, %v90_v23 }
  0xb9   :  { %v99_v26 = vsel %vm98_vm2, %v96_v25, -inf }
  0xba   :  { %100 = vmax.xlane.f32.xlu1 %v99_v26 }
 0x143   :  { %v101_v29 = vpop.xlane.xlu1 %100 }
 0x144   :  { %v106_v30 = vrot.slane %v101_v29, %v66_v8  ;;  %v110_v31 = vrot.slane %v101_v29, %v109_v28 }
 0x146   :  { %v113_v32 = vsub.f32 %v79_v21, %v106_v30  ;;  %v114_v33 = vsub.f32 %v82_v22, %v110_v31 }
 0x148   :  { %v115_v34 = vmul.f32 1.442695, %v113_v32  ;;  %v117_v35 = vmul.f32 1.442695, %v114_v33 }
 0x14a   :  { %199 = vpow2.f32 %v115_v34 }
 0x14b   :  { %201 = vpow2.f32 %v117_v35 }
 0x157   :  { %v200_v36 = vpop.eup %199 }
 0x158   :  { %v202_v37 = vpop.eup %201  ;;  %122 = vperm.xlu1 %197, %v200_v36  }
 0x159   :  { %125 = vperm.xlu0 %198, %v202_v37  }
 0x1d3   :  { %v123_v38 = vpop.permute.xlu1 %122 }
 0x1d4   :  { %v126_v39 = vpop.permute.xlu0 %125  ;;  %v130_v40 = vrot.slane %v123_v38, %v299_v6 }
 0x1d5   :  { %v134_v41 = vrot.slane %v126_v39, %v299_v6 }
 0x1d7   :  { %v135_v42 = vsel %vm95_vm1, %v134_v41, %v130_v40 }
 0x1d8   :  { %v137_v43 = vsel %vm98_vm2, %v135_v42, 0.0 }
 0x1d9   :  { %138 = vadd.xlane.f32.xlu1 %v137_v43 }
 0x262   :  { %v139_v44 = vpop.xlane.xlu1 %138 }
 0x263   :  { %203 = vrcp.f32 %v139_v44 }
 0x270   :  { %v204_v45 = vpop.eup %203 }
 0x271   :  { %v145_v46 = vrot.slane %v204_v45, %v66_v8  ;;  %v149_v48 = vrot.slane %v204_v45, %v109_v28 }
 0x273   :  { %v152_v47 = vmul.f32 %v200_v36, %v145_v46  ;;  %v153_v49 = vmul.f32 %v202_v37, %v149_v48 }
 0x275   :  { %157 = vperm.xlu0 %198, %v152_v47  }
 0x279   :  { %160 = vperm.xlu0 %198, %v153_v49  }
 0x2f0   :  { %v158_v50 = vpop.permute.xlu0 %157 }
 0x2f1   :  { %v165_v52 = vrot.slane %v158_v50, %v299_v6 }
 0x2f4   :  { %v161_v51 = vpop.permute.xlu0 %160 }
 0x2f5   :  { %v169_v53 = vrot.slane %v161_v51, %v299_v6 }
 0x2f7   :  { %v170_v54 = vsel %vm95_vm1, %v169_v53, %v165_v52 }
 0x2f8   :  { %172 = vst.msk [vmem:[#allocation7] sm:$0x3] %vm98_vm2, %v170_v54 }
 0x2f9   :  { %256 = shalt.err (!%p253_p0)
}
 0x2fa   :  { %182 = dma.vmem_to_hbm [thread:$0]  %s180_s1, 32, %s318_s2, [#allocation4]  }
 0x2fb   :  { %269 = dma.done.wait [#allocation4], 32  }
 0x2fc   :  { %270 = vsyncadd [#allocation4], 4294967264 }
 0x2fd   :  { %186 = vsyncpa [#allocation3], 1 }
 0x2fe   :  { %187 = vsyncpa [#allocation6], 1 }
 0x2ff   :  { %188 = vsyncpa [#allocation4], 1 }

</bundles_post_ra>
